<compile_context>
chip_gen: v6e
topology: v6e:2x2x1
jax: 0.10.0
libtpu: 0.0.40
codegen_flags: <defaults>
</compile_context>

<pallas_src>
import math

import jax
import jax.numpy as jnp
from jax.experimental import pallas as pl
from jax.experimental.pallas import tpu as pltpu

NEURON_COUNT = 64
_MEGACORE_SPLIT_MIN_B = 1024  # only force >=2 grid steps (for v7x's 2 TCs) above this batch size


def _round_up(n, m):
    return ((n + m - 1) // m) * m


def _policy_kernel(x_ref, w1_ref, b1_ref, w2_ref, b2_ref, w3_ref, b3_ref, mean_ref):
    # Fused MLP hot path: (TB,I)@(I,H) -> relu -> (TB,H)@(H,H) -> relu -> (TB,H)@(H,O)
    # Operands arrive in the wrapper's compute dtype (bf16); accumulation is f32 on the MXU.
    x = x_ref[...]
    h1 = jnp.dot(x, w1_ref[...], preferred_element_type=jnp.float32) + b1_ref[...]
    h1 = jnp.maximum(h1, 0.0)
    h2 = jnp.dot(h1.astype(w2_ref.dtype), w2_ref[...],
                 preferred_element_type=jnp.float32) + b2_ref[...]
    h2 = jnp.maximum(h2, 0.0)
    mean = jnp.dot(h2.astype(w3_ref.dtype), w3_ref[...],
                   preferred_element_type=jnp.float32) + b3_ref[...]
    mean_ref[...] = mean.astype(mean_ref.dtype)


def policy_forward(x, params, *, block_b=4096, compute_dtype=jnp.bfloat16):
    """x: (B, num_inputs) float32. Returns (action_mean, action_log_std, action_std)."""
    w1, b1, w2, b2, w3, b3, log_std = params
    B, num_inputs = x.shape
    num_outputs = w3.shape[1]

    # Batch tile: multiple of 8 (sublane constraint), big enough to amortize grid-step overhead.
    tb = min(block_b, _round_up(B, 8))
    # v7x has 2 TensorCores: for large batches make sure the "parallel" grid has >=2 steps so
    # both cores get work; extra step is harmless on single-TC v5e/v6e (and skipped for small B).
    if B >= _MEGACORE_SPLIT_MIN_B and pl.cdiv(B, tb) < 2:
        tb = _round_up(pl.cdiv(B, 2), 8)
    grid = (pl.cdiv(B, tb),)  # ragged last block: OOB reads are padded, OOB writes dropped

    # bf16 operands: halves the dominant HBM stream (x) and uses the native bf16 MXU path.
    xk = x.astype(compute_dtype)
    w1k = w1.astype(compute_dtype)
    w2k = w2.astype(compute_dtype)
    w3k = w3.astype(compute_dtype)

    flops = 2 * B * (num_inputs * NEURON_COUNT
                     + NEURON_COUNT * NEURON_COUNT
                     + NEURON_COUNT * num_outputs)
    bytes_accessed = (xk.size * xk.dtype.itemsize
                      + sum(a.size * a.dtype.itemsize for a in (w1k, b1, w2k, b2, w3k, b3))
                      + B * num_outputs * 4)

    def const_spec(shape):
        return pl.BlockSpec(shape, lambda i: (0, 0))

    mean = pl.pallas_call(
        _policy_kernel,
        out_shape=jax.ShapeDtypeStruct((B, num_outputs), jnp.float32),
        grid_spec=pltpu.PrefetchScalarGridSpec(
            num_scalar_prefetch=0,
            grid=grid,
            in_specs=[
                pl.BlockSpec((tb, num_inputs), lambda i: (i, 0)),  # x tile marches over batch
                const_spec(w1k.shape), const_spec(b1.shape),       # params stay VMEM-resident
                const_spec(w2k.shape), const_spec(b2.shape),
                const_spec(w3k.shape), const_spec(b3.shape),
            ],
            out_specs=pl.BlockSpec((tb, num_outputs), lambda i: (i, 0)),
        ),
        compiler_params=pltpu.CompilerParams(
            dimension_semantics=("parallel",)),  # lets v7x shard batch tiles across its 2 TCs
        cost_estimate=pl.CostEstimate(flops=flops, transcendentals=0,
                                      bytes_accessed=bytes_accessed),
    )(xk, w1k, b1, w2k, b2, w3k, b3)

    # log_std / std do not depend on x: exp once on the (1, N) row; broadcast stays lazy under
    # jit (kept dense here to preserve the module's expand_as semantics).
    action_log_std = jnp.broadcast_to(log_std, (B, num_outputs))
    action_std = jnp.broadcast_to(jnp.exp(log_std), (B, num_outputs))
    return mean, action_log_std, action_std


def init_policy_params(key, num_inputs, num_outputs):
    """Deterministic init mimicking PyTorch nn.Linear default (U(-1/sqrt(fan_in), +1/sqrt(fan_in))).
    Weights are stored transposed: (in_features, out_features)."""
    ks = jax.random.split(key, 6)

    def linear(kw, kb, fan_in, fan_out):
        bound = 1.0 / math.sqrt(fan_in)
        w = jax.random.uniform(kw, (fan_in, fan_out), jnp.float32, -bound, bound)
        b = jax.random.uniform(kb, (1, fan_out), jnp.float32, -bound, bound)
        return w, b

    w1, b1 = linear(ks[0], ks[1], num_inputs, NEURON_COUNT)
    w2, b2 = linear(ks[2], ks[3], NEURON_COUNT, NEURON_COUNT)
    w3, b3 = linear(ks[4], ks[5], NEURON_COUNT, num_outputs)
    # action_mean.weight *= 0.1 ; action_mean.bias *= 0.0
    w3 = w3 * 0.1
    b3 = b3 * 0.0
    # action_log_std = zeros(1, num_outputs)
    log_std = jnp.zeros((1, num_outputs), jnp.float32)
    return (w1, b1, w2, b2, w3, b3, log_std)


def _reference_forward(x, params):
    w1, b1, w2, b2, w3, b3, log_std = params
    h1 = jnp.maximum(x @ w1 + b1, 0.0)
    h2 = jnp.maximum(h1 @ w2 + b2, 0.0)
    mean = h2 @ w3 + b3
    ls = jnp.broadcast_to(log_std, mean.shape)
    return mean, ls, jnp.exp(ls)


if __name__ == "__main__":
    key = jax.random.PRNGKey(0)
    k_param, k_x, k_x2 = jax.random.split(key, 3)

    num_inputs, num_outputs, batch = 16, 8, 8
    params = init_policy_params(k_param, num_inputs, num_outputs)
    x = jax.random.normal(k_x, (batch, num_inputs), jnp.float32)

    # single-tile path (batch fits in one block)
    mean, log_std, std = policy_forward(x, params)
    jax.block_until_ready((mean, log_std, std))

    r_mean, r_ls, r_std = _reference_forward(x, params)
    assert mean.shape == (batch, num_outputs)
    assert log_std.shape == (batch, num_outputs)
    assert std.shape == (batch, num_outputs)
    # bf16 compute path vs f32 reference: tolerance covers the bf16 rounding of x / weights.
    assert jnp.allclose(mean, r_mean, atol=1e-2)
    assert jnp.allclose(log_std, r_ls, atol=1e-6)
    assert jnp.allclose(std, r_std, atol=1e-5)

    # multi-step gridded path with a ragged final block (batch=20, tile=8 -> 3 grid steps,
    # last block covers rows 16..23 with rows 20..23 masked by Pallas)
    batch2 = 20
    x2 = jax.random.normal(k_x2, (batch2, num_inputs), jnp.float32)
    m2, ls2, s2 = policy_forward(x2, params, block_b=8)
    jax.block_until_ready((m2, ls2, s2))
    r_m2, r_ls2, r_s2 = _reference_forward(x2, params)
    assert m2.shape == (batch2, num_outputs)
    assert jnp.allclose(m2, r_m2, atol=1e-2)
    assert jnp.allclose(ls2, r_ls2, atol=1e-6)
    assert jnp.allclose(s2, r_s2, atol=1e-5)

    print("KERNEL_OK")
</pallas_src>

<mosaic_0001>
module attributes {stable_mosaic.version = 11 : i64} {
  func.func @_policy_kernel(%arg0: i32, %arg1: memref<8x16xbf16, #tpu.memory_space<vmem>>, %arg2: memref<16x64xbf16, #tpu.memory_space<vmem>>, %arg3: memref<1x64xf32, #tpu.memory_space<vmem>>, %arg4: memref<64x64xbf16, #tpu.memory_space<vmem>>, %arg5: memref<1x64xf32, #tpu.memory_space<vmem>>, %arg6: memref<64x8xbf16, #tpu.memory_space<vmem>>, %arg7: memref<1x8xf32, #tpu.memory_space<vmem>>, %arg8: memref<8x8xf32, #tpu.memory_space<vmem>>) attributes {dimension_semantics = [#tpu.dimension_semantics<parallel>], iteration_bounds = array<i64: 1>, scalar_prefetch = 0 : i64, scratch_operands = 0 : i64, tpu.core_type = #tpu.core_type<tc>, window_params = [{transform_indices = @transform_0, window_bounds = array<i64: 8, 16>}, {pipeline_mode = #tpu.pipeline_mode<synchronous>, transform_indices = @transform_1, window_bounds = array<i64: 16, 64>}, {pipeline_mode = #tpu.pipeline_mode<synchronous>, transform_indices = @transform_2, window_bounds = array<i64: 1, 64>}, {pipeline_mode = #tpu.pipeline_mode<synchronous>, transform_indices = @transform_3, window_bounds = array<i64: 64, 64>}, {pipeline_mode = #tpu.pipeline_mode<synchronous>, transform_indices = @transform_4, window_bounds = array<i64: 1, 64>}, {pipeline_mode = #tpu.pipeline_mode<synchronous>, transform_indices = @transform_5, window_bounds = array<i64: 64, 8>}, {pipeline_mode = #tpu.pipeline_mode<synchronous>, transform_indices = @transform_6, window_bounds = array<i64: 1, 8>}, {transform_indices = @transform_7, window_bounds = array<i64: 8, 8>}]} {
    %c0 = arith.constant 0 : index
    %c0_0 = arith.constant 0 : index
    %0 = vector.load %arg1[%c0, %c0_0] : memref<8x16xbf16, #tpu.memory_space<vmem>>, vector<8x16xbf16>
    %c0_1 = arith.constant 0 : index
    %c0_2 = arith.constant 0 : index
    %1 = vector.load %arg2[%c0_1, %c0_2] : memref<16x64xbf16, #tpu.memory_space<vmem>>, vector<16x64xbf16>
    %cst = arith.constant dense<0.000000e+00> : vector<8x64xf32>
    %2 = tpu.matmul %0, %1, %cst {dimension_numbers = #tpu.dot_dimension_numbers<[1], [0], [0], [1], [0, 0, 1, 1], [], []>} : vector<8x16xbf16>, vector<16x64xbf16>, vector<8x64xf32> -> vector<8x64xf32>
    %c0_3 = arith.constant 0 : index
    %c0_4 = arith.constant 0 : index
    %3 = vector.load %arg3[%c0_3, %c0_4] : memref<1x64xf32, #tpu.memory_space<vmem>>, vector<1x64xf32>
    %4 = vector.broadcast %3 : vector<1x64xf32> to vector<8x64xf32>
    %5 = arith.addf %2, %4 : vector<8x64xf32>
    %cst_5 = arith.constant 0.000000e+00 : f32
    %6 = vector.broadcast %cst_5 : f32 to vector<8x64xf32>
    %7 = arith.maximumf %5, %6 : vector<8x64xf32>
    %8 = arith.truncf %7 : vector<8x64xf32> to vector<8x64xbf16>
    %c0_6 = arith.constant 0 : index
    %c0_7 = arith.constant 0 : index
    %9 = vector.load %arg4[%c0_6, %c0_7] : memref<64x64xbf16, #tpu.memory_space<vmem>>, vector<64x64xbf16>
    %cst_8 = arith.constant dense<0.000000e+00> : vector<8x64xf32>
    %10 = tpu.matmul %8, %9, %cst_8 {dimension_numbers = #tpu.dot_dimension_numbers<[1], [0], [0], [1], [0, 0, 1, 1], [], []>} : vector<8x64xbf16>, vector<64x64xbf16>, vector<8x64xf32> -> vector<8x64xf32>
    %c0_9 = arith.constant 0 : index
    %c0_10 = arith.constant 0 : index
    %11 = vector.load %arg5[%c0_9, %c0_10] : memref<1x64xf32, #tpu.memory_space<vmem>>, vector<1x64xf32>
    %12 = vector.broadcast %11 : vector<1x64xf32> to vector<8x64xf32>
    %13 = arith.addf %10, %12 : vector<8x64xf32>
    %cst_11 = arith.constant 0.000000e+00 : f32
    %14 = vector.broadcast %cst_11 : f32 to vector<8x64xf32>
    %15 = arith.maximumf %13, %14 : vector<8x64xf32>
    %16 = arith.truncf %15 : vector<8x64xf32> to vector<8x64xbf16>
    %c0_12 = arith.constant 0 : index
    %c0_13 = arith.constant 0 : index
    %17 = vector.load %arg6[%c0_12, %c0_13] : memref<64x8xbf16, #tpu.memory_space<vmem>>, vector<64x8xbf16>
    %cst_14 = arith.constant dense<0.000000e+00> : vector<8x8xf32>
    %18 = tpu.matmul %16, %17, %cst_14 {dimension_numbers = #tpu.dot_dimension_numbers<[1], [0], [0], [1], [0, 0, 1, 1], [], []>} : vector<8x64xbf16>, vector<64x8xbf16>, vector<8x8xf32> -> vector<8x8xf32>
    %c0_15 = arith.constant 0 : index
    %c0_16 = arith.constant 0 : index
    %19 = vector.load %arg7[%c0_15, %c0_16] : memref<1x8xf32, #tpu.memory_space<vmem>>, vector<1x8xf32>
    %20 = vector.broadcast %19 : vector<1x8xf32> to vector<8x8xf32>
    %21 = arith.addf %18, %20 : vector<8x8xf32>
    %c0_17 = arith.constant 0 : index
    %c0_18 = arith.constant 0 : index
    %22 = vector.load %arg8[%c0_17, %c0_18] : memref<8x8xf32, #tpu.memory_space<vmem>>, vector<8x8xf32>
    tpu.vector_store %arg8[%c0_17, %c0_18], %21 {strides = array<i32>} : memref<8x8xf32, #tpu.memory_space<vmem>>, vector<8x8xf32>,
    return
  }
  func.func @transform_0(%arg0: i32) -> (i32, i32) {
    %c0_i32 = arith.constant 0 : i32
    %c0_i32_0 = arith.constant 0 : i32
    return %arg0, %c0_i32 : i32, i32
  }
  func.func @transform_1(%arg0: i32) -> (i32, i32) {
    %c0_i32 = arith.constant 0 : i32
    %c0_i32_0 = arith.constant 0 : i32
    %c0_i32_1 = arith.constant 0 : i32
    return %c0_i32, %c0_i32_0 : i32, i32
  }
  func.func @transform_2(%arg0: i32) -> (i32, i32) {
    %c0_i32 = arith.constant 0 : i32
    %c0_i32_0 = arith.constant 0 : i32
    %c0_i32_1 = arith.constant 0 : i32
    return %c0_i32, %c0_i32_0 : i32, i32
  }
  func.func @transform_3(%arg0: i32) -> (i32, i32) {
    %c0_i32 = arith.constant 0 : i32
    %c0_i32_0 = arith.constant 0 : i32
    %c0_i32_1 = arith.constant 0 : i32
    return %c0_i32, %c0_i32_0 : i32, i32
  }
  func.func @transform_4(%arg0: i32) -> (i32, i32) {
    %c0_i32 = arith.constant 0 : i32
    %c0_i32_0 = arith.constant 0 : i32
    %c0_i32_1 = arith.constant 0 : i32
    return %c0_i32, %c0_i32_0 : i32, i32
  }
  func.func @transform_5(%arg0: i32) -> (i32, i32) {
    %c0_i32 = arith.constant 0 : i32
    %c0_i32_0 = arith.constant 0 : i32
    %c0_i32_1 = arith.constant 0 : i32
    return %c0_i32, %c0_i32_0 : i32, i32
  }
  func.func @transform_6(%arg0: i32) -> (i32, i32) {
    %c0_i32 = arith.constant 0 : i32
    %c0_i32_0 = arith.constant 0 : i32
    %c0_i32_1 = arith.constant 0 : i32
    return %c0_i32, %c0_i32_0 : i32, i32
  }
  func.func @transform_7(%arg0: i32) -> (i32, i32) {
    %c0_i32 = arith.constant 0 : i32
    %c0_i32_0 = arith.constant 0 : i32
    return %arg0, %c0_i32 : i32, i32
  }
}

</mosaic_0001>

<bundles_post_ra>
// kernel: tpu_custom_call.1
= control target key start
LH: loop header
LB: loop body
LE: loop exit
PB: predicated region body
PF: predicated region fallthrough
CT: control target
= control target key end

     0   :  { %12 = vsyncpa [#allocation3], 0  ;;  %s525_s0 = inlined_call_operand.hbm [shape: bf16[8,16], index: 0, kind: input, shape index: {}]   ;;  %s526_s1 = inlined_call_operand.vmem [shape: bf16[16,64], index: 1, kind: input, shape index: {}]   ;;  %s527_s2 = inlined_call_operand.vmem [shape: f32[1,64], index: 2, kind: input, shape index: {}]   ;;  %s528_s3 = inlined_call_operand.vmem [shape: bf16[64,64], index: 3, kind: input, shape index: {}]   ;;  %s529_s4 = inlined_call_operand.hbm [shape: f32[1,64], index: 4, kind: input, shape index: {}]   ;;  %s530_s5 = inlined_call_operand.vmem [shape: bf16[64,8], index: 5, kind: input, shape index: {}]   ;;  %s531_s6 = inlined_call_operand.vmem [shape: f32[1,8], index: 6, kind: input, shape index: {}]   ;;  %s532_s7 = inlined_call_operand.hbm [shape: f32[8,8], index: 7, kind: output, shape index: {}]  }
   0x1   :  { %13 = vsyncpa [#allocation6], 0 }
   0x2   :  { %14 = vsyncpa [#allocation4], 0  ;;  %s436_s24 = smov [#allocation2]   ;;  %s437_s26 = smov [#allocation5]  }
   0x3   :  { %s21_s25 = sshll.u32 %s436_s24, 4  ;;  %s37_s27 = sshll.u32 %s437_s26, 4  ;;  %s22_s25 = int_to_ptr.vmem [resolvable:$true] %s21_s25  ;;  %s38_s27 = int_to_ptr.vmem [resolvable:$true] %s37_s27 }
   0x4   :  { %s378_s28 = scalar_lea.vmem %s22_s25, 64  ;;  %p383_p1 = scmp.lt.s32.totalorder %s22_s25, %s22_s25 }
   0x5   :  { %p379_p0 = scmp.ne.s32.totalorder %s22_s25, %s378_s28  ;;  %p384_p2 = scmp.lt.s32.totalorder %s378_s28, %s378_s28 }
   0x7   :  { %p385_p3 = por %p384_p2, %p383_p1 }
   0x9   :  { %p386_p4 = pnand %p385_p3, %p379_p0 }
   0xb   :  { %389 = shalt.err (!%p386_p4)
}
   0xc   :  { %24 = dma.hbm_to_vmem [thread:$0]  %s525_s0, 64, %s22_s25, [#allocation3]  }
   0xd   :  { %s398_s8 = scalar_lea.vmem %s38_s27, 16  ;;  %s402_s9 = scalar_lea.vmem %s38_s27, 32 }
   0xe   :  { %p399_p5 = scmp.ne.s32.totalorder %s38_s27, %s398_s8  ;;  %p403_p6 = scmp.lt.s32.totalorder %s38_s27, %s38_s27 }
   0xf   :  { %p404_p7 = scmp.lt.s32.totalorder %s402_s9, %s398_s8 }
  0x11   :  { %p405_p8 = por %p404_p7, %p403_p6 }
  0x13   :  { %p406_p9 = pnand %p405_p8, %p399_p5 }
  0x15   :  { %409 = shalt.err (!%p406_p9)
}
  0x16   :  { %40 = dma.hbm_to_vmem [thread:$0]  %s529_s4, 16, %s38_s27, [#allocation6]  }
  0x17   :  { %430 = dma.done.wait [#allocation3], 64  }
  0x18   :  { %431 = vsyncadd [#allocation3], 4294967232 }
  0x19   :  { %432 = dma.done.wait [#allocation6], 16  }
  0x1a   :  { %433 = vsyncadd [#allocation6], 4294967280  ;;  %v438_v0 = vmov 0.0   ;;  %vm439_vm0 = vmmov 0   ;;  %v361_v1 = vld [vmem:[%s526_s1] sm:$0xff]   ;;  %vm68_vm1 = vcmask 130048  }
  0x1b   :  { %326 = vmatprep.subr.bf16.mxu0 %v438_v0  ;;  %328 = vmatprep.mubr.msk.bf16.mxu0 %vm439_vm0, %v438_v0  ;;  %v52_v2 = vld [vmem:[#allocation2] sm:$0xf]  ;;  %v362_v3 = vld [vmem:[%s528_s3 + $0x18] sm:$0xff]   ;;  %v363_v4 = vld [vmem:[%s528_s3 + $0x10] sm:$0xff]   ;;  %vm153_vm2 = vcmask 523264   ;;  %s440_s29 = smov [#allocation7]  }
  0x1c   :  { %332 = vmatprep.subr.bf16.mxu1 %v438_v0  ;;  %340 = vmatprep.mubr.msk.bf16.mxu1 %vm439_vm0, %v438_v0  ;;  %v364_v5 = vld [vmem:[%s528_s3 + $0x8] sm:$0xff]   ;;  %v365_v6 = vld [vmem:[%s528_s3] sm:$0xff]   ;;  %v366_v7 = vld [vmem:[%s530_s5 + $0x18] sm:$0xff]   ;;  %s289_s30 = sshll.u32 %s440_s29, 4  ;;  %vm281_vm3 = vcmask 64512   ;;  %s290_s30 = int_to_ptr.vmem [resolvable:$true] %s289_s30 }
  0x1d   :  { %327 = vmatpush3.bf16.msra.mxu0 %v361_v1  ;;  %333 = vmatpush3.bf16.msra.mxu1 %v362_v3  ;;  %v367_v8 = vld [vmem:[%s530_s5 + $0x10] sm:$0xff]   ;;  %v299_v9 = vld [vmem:[%s527_s2] ss:$0 sm:$0xff]  ;;  %v368_v17 = vld [vmem:[%s530_s5 + $0x8] sm:$0xff]   ;;  %p415_p11 = scmp.lt.s32.totalorder %s290_s30, %s290_s30 }
  0x1e   :  { %344 = vmatprep.subr.bf16.mxu0 %v438_v0  ;;  %334 = vmatprep.subr.bf16.mxu1 %v438_v0  ;;  %v369_v18 = vld [vmem:[%s530_s5] sm:$0xff]   ;;  %s410_s5 = scalar_lea.vmem %s290_s30, 128 }
  0x1f   :  { %v302_v19 = vld [vmem:[#allocation5] ss:$0 sm:$0xff]  ;;  %v308_v27 = vld [vmem:[%s531_s6] ss:$0 sm:$0xff]  ;;  %p411_p10 = scmp.ne.s32.totalorder %s290_s30, %s410_s5  ;;  %p416_p12 = scmp.lt.s32.totalorder %s410_s5, %s410_s5 }
  0x20   :  { %329 = vmatmul.mubr.msk.bf16.vlgmr.msra.gmra.mxu0 %vm68_vm1, %v52_v2 }
  0x21   :  { %352 = vmatprep.mubr.msk.bf16.mxu0 %vm439_vm0, %v438_v0  ;;  %335 = vmatpush3.bf16.msra.mxu1 %v363_v4  ;;  %p417_p13 = por %p416_p12, %p415_p11 }
  0x22   :  { %336 = vmatprep.subr.bf16.mxu1 %v438_v0  ;;  %345 = vmatpush3.bf16.msra.mxu0 %v366_v7 }
  0x23   :  { %346 = vmatprep.subr.bf16.mxu0 %v438_v0  ;;  %p418_p0 = pnand %p417_p13, %p411_p10 }
  0x25   :  { %337 = vmatpush3.bf16.msra.mxu1 %v364_v5 }
  0x26   :  { %338 = vmatprep.subr.bf16.mxu1 %v438_v0  ;;  %347 = vmatpush3.bf16.msra.mxu0 %v367_v8 }
  0x27   :  { %348 = vmatprep.subr.bf16.mxu0 %v438_v0 }
  0x29   :  { %339 = vmatpush3.bf16.msra.mxu1 %v365_v6 }
  0x2a   :  { %349 = vmatpush3.bf16.msra.mxu0 %v368_v17 }
  0x2b   :  { %350 = vmatprep.subr.bf16.mxu0 %v438_v0 }
  0x2e   :  { %351 = vmatpush3.bf16.msra.mxu0 %v369_v18 }
  0xe0   :  { %v106_v10 = vpop.f32.mrf.mxu0 }
  0xe1   :  { %v107_v11 = vadd.f32 %v299_v9, %v106_v10 }
  0xe2   :  { %v330_v12 = vpop.f32.mrf.mxu0 }
  0xe3   :  { %v112_v13 = vmax.f32 %v107_v11, 0.0 }
  0xe4   :  { %v109_v14 = vpop.f32.mrf.mxu0 }
  0xe5   :  { %v113_v15 = vpack.c.bf16 %v112_v13, %v112_v13 }
  0xe6   :  { %v331_v16 = vpop.f32.mrf.mxu0 }
  0xe7   :  { %341 = vmatmul.mubr.msk.bf16.vlgmr.msra.gmra.mxu1 %vm153_vm2, %v113_v15 }
 0x1a7   :  { %v191_v20 = vpop.f32.mrf.mxu1 }
 0x1a8   :  { %v192_v21 = vadd.f32 %v302_v19, %v191_v20 }
 0x1a9   :  { %v342_v22 = vpop.f32.mrf.mxu1 }
 0x1aa   :  { %v197_v23 = vmax.f32 %v192_v21, 0.0 }
 0x1ab   :  { %v194_v24 = vpop.f32.mrf.mxu1 }
 0x1ac   :  { %v198_v25 = vpack.c.bf16 %v197_v23, %v197_v23 }
 0x1ad   :  { %v343_v26 = vpop.f32.mrf.mxu1 }
 0x1ae   :  { %353 = vmatmul.mubr.msk.bf16.vlgmr.msra.gmra.mxu0 %vm153_vm2, %v198_v25 }
 0x26e   :  { %v275_v28 = vpop.f32.mrf.mxu0 }
 0x26f   :  { %v276_v29 = vadd.f32 %v308_v27, %v275_v28 }
 0x270   :  { %v354_v30 = vpop.f32.mrf.mxu0 }
 0x271   :  { %282 = vst.msk [vmem:[#allocation7] sm:$0xff] %vm281_vm3, %v276_v29 }
 0x272   :  { %v278_v31 = vpop.f32.mrf.mxu0 }
 0x273   :  { %421 = shalt.err (!%p418_p0)
}
 0x274   :  { %292 = dma.vmem_to_hbm [thread:$0]  %s290_s30, 128, %s532_s7, [#allocation4]   ;;  %v355_v32 = vpop.f32.mrf.mxu0 }
 0x275   :  { %434 = dma.done.wait [#allocation4], 128  }
 0x276   :  { %435 = vsyncadd [#allocation4], 4294967168 }
 0x277   :  { %296 = vsyncpa [#allocation3], 1 }
 0x278   :  { %297 = vsyncpa [#allocation6], 1 }
 0x279   :  { %298 = vsyncpa [#allocation4], 1 }

</bundles_post_ra>
